<compile_context>
chip_gen: v7x
topology: tpu7x:2x2x1
jax: 0.10.0
libtpu: 0.0.40
codegen_flags: <defaults>
</compile_context>

<pallas_src>
import jax
import jax.numpy as jnp
from jax.experimental import pallas as pl
from jax.experimental.pallas import tpu as pltpu

_MIB = 1024 * 1024

# Candidate lane widths (multiples of 128) for a fully unmasked output slab.
_LANE_WIDTHS = (32768, 16384, 8192, 4096, 2048, 1024, 512, 256, 128)


def _fp32_silu_kernel(x_ref, o_ref):
    # Upcast to f32, SiLU = x * sigmoid(x) (EUP exp + VPU mul), downcast.
    # Memory-bound on all generations; keep the straightforward form.
    x = x_ref[...].astype(jnp.float32)
    o_ref[...] = (x * jax.nn.sigmoid(x)).astype(o_ref.dtype)


def _device_budget():
    """Return (per-direction tile IO bytes, scoped-VMEM limit bytes)."""
    try:
        vmem_cap = int(pltpu.get_tpu_info().vmem_capacity_bytes)
    except Exception:
        vmem_cap = 64 * _MIB  # conservative default (v7x per-TC size)
    if vmem_cap >= 96 * _MIB:
        # v5e / v6e: 128 MiB physical VMEM. 8 MiB per direction =>
        # 2 bufs x (in+out) + f32 temps stays well under the 96 MiB limit.
        return 8 * _MIB, 96 * _MIB
    # v7x: 64 MiB per TensorCore. 4 MiB per direction keeps double-buffered
    # IO (+ f32 upcast temporaries of a bf16 tile) comfortably under 48 MiB.
    return 4 * _MIB, 48 * _MIB


def _as_2d(x: jax.Array) -> jax.Array:
    """Flatten to a 2-D slab with a lane-dense last axis.

    Preference order: a multiple-of-128 divisor of the total size (unmasked
    vst), then the widest divisor >= 128 (near lane-dense, full-extent last
    dim keeps the block legal), then a single long row whose column axis is
    tiled in 128-lane blocks with one masked tail block.
    """
    size = x.size
    for w in _LANE_WIDTHS:
        if size % w == 0:
            return x.reshape(-1, w)
    # Widest divisor of size in [128, 32768] (trace-time Python search).
    w = min(size, 32768)
    while w >= 128:
        if size % w == 0:
            return x.reshape(-1, w)
        w -= 1
    # Last resort (tiny / prime sizes): one long lane-dense row.
    return x.reshape(1, size)


def fp32_silu(x: jax.Array) -> jax.Array:
    """SiLU with float32 internal compute; output keeps the input dtype."""
    orig_shape = x.shape
    orig_dtype = x.dtype

    if x.size == 0:
        # Degenerate pallas_call avoided; semantics preserved.
        return x

    x2 = _as_2d(x)
    rows, cols = x2.shape

    itemsize = x2.dtype.itemsize
    # Sublane granularity: 8 for 4-byte, 16 for 2-byte, 32 for 1-byte dtypes.
    sublane = max(8, 32 // max(1, itemsize))

    tile_io_bytes, vmem_limit_bytes = _device_budget()
    # Tile elements from the BYTE budget so every dtype moves the same amount
    # of HBM traffic per grid step (>=4 MiB per direction => near roofline,
    # per-step ~0.35 us overhead amortized away).
    tile_elems = max(tile_io_bytes // itemsize, sublane * 128)

    # Choose (tr, tc) so a tile holds ~tile_elems elements.
    if cols * sublane <= tile_elems:
        tc = cols  # full-width rows fit within the tile budget
    else:
        # Very wide feature axis: tile columns too (multiple of 128 lanes).
        tc = max(128, min(cols, (tile_elems // sublane) // 128 * 128))
    tr = tile_elems // max(1, tc)
    tr = max(sublane, (tr // sublane) * sublane)
    if tr >= rows:
        tr = rows  # full-extent block dim is always legal
    if tc >= cols:
        tc = cols

    # Guarantee >= 2 (ideally >= 4) blocks so "parallel" grid axes can shard
    # across v7x's two TensorCores (harmless on single-TC v5e/v6e). Only
    # shrinks tr, so the VMEM budget above still holds.
    if rows > sublane and pl.cdiv(rows, tr) * pl.cdiv(cols, tc) < 2:
        target_blocks = 4 if rows >= 4 * sublane else 2
        tr_split = (rows + target_blocks - 1) // target_blocks
        tr = max(sublane, (tr_split + sublane - 1) // sublane * sublane)

    grid = (pl.cdiv(rows, tr), pl.cdiv(cols, tc))

    n = rows * cols
    cost = pl.CostEstimate(
        flops=4 * n,                       # mul/add chain around the exp
        transcendentals=n,                 # one exp per element
        bytes_accessed=2 * n * itemsize,   # read + write
    )

    out = pl.pallas_call(
        _fp32_silu_kernel,
        out_shape=jax.ShapeDtypeStruct((rows, cols), orig_dtype),
        grid_spec=pltpu.PrefetchScalarGridSpec(
            num_scalar_prefetch=0,
            grid=grid,
            in_specs=[pl.BlockSpec((tr, tc), lambda i, j: (i, j))],
            out_specs=pl.BlockSpec((tr, tc), lambda i, j: (i, j)),
        ),
        compiler_params=pltpu.CompilerParams(
            dimension_semantics=("parallel", "parallel"),
            vmem_limit_bytes=vmem_limit_bytes,
        ),
        cost_estimate=cost,
    )(x2)

    return out.reshape(orig_shape)


def _reference(x: jax.Array) -> jax.Array:
    xf = x.astype(jnp.float32)
    return (xf * jax.nn.sigmoid(xf)).astype(x.dtype)


if __name__ == "__main__":
    key = jax.random.PRNGKey(0)
    k0, k1 = jax.random.split(key)

    # Example hidden-state shape (batch=2, seq=8, hidden=32), bfloat16 input
    # to exercise the upcast->compute->downcast path (lane-dense slab path).
    x_bf16 = jax.random.normal(k0, (2, 8, 32), dtype=jnp.bfloat16)
    y_bf16 = jax.block_until_ready(fp32_silu(x_bf16))
    ref_bf16 = _reference(x_bf16)
    assert y_bf16.shape == x_bf16.shape and y_bf16.dtype == x_bf16.dtype
    assert jnp.allclose(
        y_bf16.astype(jnp.float32), ref_bf16.astype(jnp.float32),
        atol=1e-2, rtol=1e-2,
    )

    # Odd-shaped f32 input exercises the non-128-divisible fallback path.
    x_f32 = jax.random.normal(k1, (3, 5, 7), dtype=jnp.float32)
    y_f32 = jax.block_until_ready(fp32_silu(x_f32))
    ref_f32 = _reference(x_f32)
    assert y_f32.shape == x_f32.shape and y_f32.dtype == x_f32.dtype
    assert jnp.allclose(y_f32, ref_f32, atol=1e-5, rtol=1e-5)

    # Zero-size input exercises the early-return path.
    x_empty = jnp.zeros((0, 4), dtype=jnp.float32)
    y_empty = jax.block_until_ready(fp32_silu(x_empty))
    assert y_empty.shape == x_empty.shape and y_empty.dtype == x_empty.dtype

    print("KERNEL_OK")
</pallas_src>

<mosaic_0001>
module attributes {stable_mosaic.version = 11 : i64} {
  func.func @_fp32_silu_kernel(%arg0: i32, %arg1: i32, %arg2: memref<1x512xbf16, #tpu.memory_space<vmem>>, %arg3: memref<1x512xbf16, #tpu.memory_space<vmem>>) attributes {dimension_semantics = [#tpu.dimension_semantics<parallel>, #tpu.dimension_semantics<parallel>], iteration_bounds = array<i64: 1, 1>, scalar_prefetch = 0 : i64, scratch_operands = 0 : i64, tpu.core_type = #tpu.core_type<tc>, window_params = [{transform_indices = @transform_0, window_bounds = array<i64: 1, 512>}, {transform_indices = @transform_1, window_bounds = array<i64: 1, 512>}]} {
    %c0 = arith.constant 0 : index
    %c0_0 = arith.constant 0 : index
    %0 = vector.load %arg2[%c0, %c0_0] : memref<1x512xbf16, #tpu.memory_space<vmem>>, vector<1x512xbf16>
    %1 = arith.extf %0 : vector<1x512xbf16> to vector<1x512xf32>
    %2 = arith.negf %1 : vector<1x512xf32>
    %3 = math.exp %2 : vector<1x512xf32>
    %cst = arith.constant 1.000000e+00 : f32
    %4 = vector.broadcast %cst : f32 to vector<1x512xf32>
    %5 = arith.addf %4, %3 : vector<1x512xf32>
    %6 = arith.divf %4, %5 : vector<1x512xf32>
    %7 = arith.mulf %1, %6 : vector<1x512xf32>
    %8 = arith.truncf %7 : vector<1x512xf32> to vector<1x512xbf16>
    %c0_1 = arith.constant 0 : index
    %c0_2 = arith.constant 0 : index
    %9 = vector.load %arg3[%c0_1, %c0_2] : memref<1x512xbf16, #tpu.memory_space<vmem>>, vector<1x512xbf16>
    tpu.vector_store %arg3[%c0_1, %c0_2], %8 {strides = array<i32>} : memref<1x512xbf16, #tpu.memory_space<vmem>>, vector<1x512xbf16>,
    return
  }
  func.func @transform_0(%arg0: i32, %arg1: i32) -> (i32, i32) {
    %c0_i32 = arith.constant 0 : i32
    return %arg0, %arg1 : i32, i32
  }
  func.func @transform_1(%arg0: i32, %arg1: i32) -> (i32, i32) {
    %c0_i32 = arith.constant 0 : i32
    return %arg0, %arg1 : i32, i32
  }
}

</mosaic_0001>

<bundles_post_ra>
// kernel: tpu_custom_call.1
= control target key start
LH: loop header
LB: loop body
LE: loop exit
PB: predicated region body
PF: predicated region fallthrough
CT: control target
= control target key end

     0   :  { %6 = vsyncpa [#allocation3], 0  ;;  %s224_s0 = inlined_call_operand.hbm [shape: bf16[1,512], index: 0, kind: input, shape index: {}]   ;;  %s225_s1 = inlined_call_operand.hbm [shape: bf16[1,512], index: 1, kind: output, shape index: {}]  }
   0x1   :  { %7 = vsyncpa [#allocation4], 0  ;;  %s175_s6 = smov [#allocation2]   ;;  %s127_s10 = scalar_lea.hbm %s224_s0, 64 }
   0x2   :  { %s14_s7 = sshll.u32 %s175_s6, 4  ;;  %p128_p0 = scmp.ne.s32.totalorder %s224_s0, %s127_s10  ;;  %s15_s7 = int_to_ptr.vmem [resolvable:$true] %s14_s7 }
   0x3   :  { %p131_p1 = scmp.lt.u32.totalorder %s127_s10, %s224_s0 }
   0x5   :  { %p133_p2 = pnand %p131_p1, %p128_p0 }
   0x7   :  { %136 = shalt.err (!%p133_p2)
}
   0x8   :  { %s137_s15 = scalar_lea.vmem %s15_s7, 64  ;;  %p142_p4 = scmp.lt.s32.totalorder %s15_s7, %s15_s7 }
   0x9   :  { %p138_p3 = scmp.ne.s32.totalorder %s15_s7, %s137_s15  ;;  %p143_p5 = scmp.lt.s32.totalorder %s137_s15, %s137_s15 }
   0xb   :  { %p144_p6 = por %p143_p5, %p142_p4 }
   0xd   :  { %p145_p7 = pnand %p144_p6, %p138_p3 }
   0xf   :  { %148 = shalt.err (!%p145_p7)
}
  0x10   :  { %17 = dma.hbm_to_vmem [thread:$0]  %s224_s0, 64, %s15_s7, [#allocation3]  }
  0x11   :  { %171 = dma.done.wait [#allocation3], 64  }
  0x12   :  { %172 = vsyncadd [#allocation3], 4294967232  ;;  %v21_v0 = vld [vmem:[#allocation2] sm:$0xf]  ;;  %v31_v5 = vlaneseq  ;;  %v176_v6 = vmov 1966171168  }
  0x13   :  { %v22_v1 = vunpack.c.l.bf16 %v21_v0  ;;  %v62_v7 = vunpack.c.l.s4 %v176_v6  ;;  %vm84_vm0 = vcmask 1040384   ;;  %vm85_vm1 = vsmask.f32 256  ;;  %s177_s0 = smov [#allocation5]   ;;  %v99_v28 = vld [vmem:[#allocation5] sm:$0xf] }
  0x14   :  { %v32_v8 = vshrl.u32 %v31_v5, 7  ;;  %vm87_vm2 = vcmask 1041409   ;;  %vm88_vm3 = vsmask.f32 1280  ;;  %vm200_vm4 = vmand %vm84_vm0, %vm85_vm1  ;;  %vm91_vm6 = vcmask 1042434   ;;  %s108_s18 = sshll.u32 %s177_s0, 4  ;;  %s109_s18 = int_to_ptr.vmem [resolvable:$true] %s108_s18 }
  0x15   :  { %v117_v2 = vmul.f32 -1.442695, %v22_v1  ;;  %v63_v9 = vunpack.c.0.s8 %v62_v7  ;;  %vm204_vm5 = vmand %vm87_vm2, %vm88_vm3  ;;  %vm92_vm7 = vsmask.f32 2304  ;;  %vm95_vm10 = vcmask 1043459   ;;  %s149_s19 = scalar_lea.vmem %s109_s18, 64  ;;  %p154_p9 = scmp.lt.s32.totalorder %s109_s18, %s109_s18 }
  0x16   :  { %v33_v11 = vsub.s32 0, %v32_v8  ;;  %v37_v12 = vsub.s32 2, %v32_v8  ;;  %v41_v13 = vsub.s32 4, %v32_v8  ;;  %v45_v14 = vsub.s32 6, %v32_v8  ;;  %vm90_vm8 = vmor %vm204_vm5, %vm200_vm4  ;;  %p150_p8 = scmp.ne.s32.totalorder %s109_s18, %s149_s19  ;;  %p155_p10 = scmp.lt.s32.totalorder %s149_s19, %s149_s19 }
  0x17   :  { %123 = vpow2.f32 %v117_v2  ;;  %v66_v18 = vsub.s32 %v63_v9, %v32_v8  ;;  %vm93_vm9 = vmand %vm91_vm6, %vm92_vm7  ;;  %vm96_vm11 = vsmask.f32 3328 }
  0x18   :  { %vm94_vm12 = vmor %vm93_vm9, %vm90_vm8  ;;  %p156_p11 = por %p155_p10, %p154_p9 }
  0x19   :  { %vm97_vm13 = vmand %vm95_vm10, %vm96_vm11 }
  0x1a   :  { %vm98_vm14 = vmor %vm97_vm13, %vm94_vm12  ;;  %p157_p12 = pnand %p156_p11, %p150_p8 }
  0x21   :  { %v124_v3 = vpop.eup %123 }
  0x22   :  { %v26_v4 = vadd.f32 1.0, %v124_v3 }
  0x24   :  { %125 = vrcp.f32 %v26_v4 }
  0x2e   :  { %v126_v16 = vpop.eup %125 }
  0x2f   :  { %v29_v17 = vmul.f32 %v126_v16, %v22_v1 }
  0x31   :  { %v34_v19 = vrot.slane %v29_v17, %v33_v11  ;;  %v38_v20 = vrot.slane %v29_v17, %v37_v12  ;;  %v42_v21 = vrot.slane %v29_v17, %v41_v13  ;;  %v46_v22 = vrot.slane %v29_v17, %v45_v14 }
  0x33   :  { %v118_v23 = vpack.c.bf16 %v38_v20, %v34_v19  ;;  %v119_v24 = vpack.c.bf16 %v46_v22, %v42_v21 }
  0x35   :  { %v67_v25 = vrot.slane %v118_v23, %v66_v18  ;;  %v74_v26 = vrot.slane %v119_v24, %v66_v18 }
  0x37   :  { %v75_v27 = vcombine.low %v67_v25, %v74_v26 }
  0x39   :  { %v82_v29 = vrot.slane %v75_v27, %v66_v18 }
  0x3b   :  { %v100_v30 = vsel %vm98_vm14, %v82_v29, %v99_v28 }
  0x3c   :  { %101 = vst [vmem:[#allocation5] sm:$0xf] %v100_v30 }
  0x3d   :  { %160 = shalt.err (!%p157_p12)
}
  0x3e   :  { %s161_s22 = scalar_lea.hbm %s225_s1, 64 }
  0x3f   :  { %p162_p13 = scmp.ne.s32.totalorder %s225_s1, %s161_s22  ;;  %p165_p0 = scmp.lt.u32.totalorder %s161_s22, %s225_s1 }
  0x41   :  { %p167_p1 = pnand %p165_p0, %p162_p13 }
  0x43   :  { %170 = shalt.err (!%p167_p1)
}
  0x44   :  { %111 = dma.vmem_to_hbm [thread:$0]  %s109_s18, 64, %s225_s1, [#allocation4]  }
  0x45   :  { %173 = dma.done.wait [#allocation4], 64  }
  0x46   :  { %174 = vsyncadd [#allocation4], 4294967232 }
  0x47   :  { %115 = vsyncpa [#allocation3], 1 }
  0x48   :  { %116 = vsyncpa [#allocation4], 1 }

</bundles_post_ra>
